<compile_context>
chip_gen: v5e
topology: v5e:2x2
jax: 0.10.0
libtpu: 0.0.40
codegen_flags: <defaults>
</compile_context>

<pallas_src>
import math

import jax
import jax.numpy as jnp
from jax import lax
from jax.experimental import pallas as pl
from jax.experimental.pallas import tpu as pltpu

D_MODEL = 128
NHEAD = 4
HEAD_DIM = D_MODEL // NHEAD
LN_EPS = 1e-5


def _cross_attn_kernel(q_ref, k_ref, v_ref,
                       wq_ref, wk_ref, wv_ref, wo_ref,
                       vec_ref,
                       o_ref,
                       q_sc, m_sc, l_sc, acc_sc):
    bt, lq, d = q_ref.shape          # (b_tile, Lq, d_model); Q is f32
    lk = k_ref.shape[1]              # Lk tile
    mq = bt * lq
    cdt = k_ref.dtype                # MXU operand dtype (bf16 or f32)

    kv = pl.program_id(1)
    n_kv = pl.num_programs(1)

    def split_heads(x2d, length):
        # (bt*L, d) -> (NHEAD*bt, L, HEAD_DIM), head-major along the fused batch axis.
        parts = [x2d[:, h * HEAD_DIM:(h + 1) * HEAD_DIM].reshape(bt, length, HEAD_DIM)
                 for h in range(NHEAD)]
        return jnp.concatenate(parts, axis=0)

    @pl.when(kv == 0)
    def _():
        # Q in-projection once per batch tile (Wq / bq already pre-scaled by 1/sqrt(hd)).
        x_q = q_ref[...].reshape(mq, d).astype(cdt)
        q = jnp.dot(x_q, wq_ref[...], preferred_element_type=jnp.float32) + vec_ref[0:1, :]
        q_sc[...] = split_heads(q.astype(cdt), lq)
        m_sc[...] = jnp.full(m_sc.shape, -jnp.inf, dtype=m_sc.dtype)
        l_sc[...] = jnp.zeros(l_sc.shape, dtype=l_sc.dtype)
        acc_sc[...] = jnp.zeros(acc_sc.shape, dtype=acc_sc.dtype)

    # K / V in-projections for this Lk tile: single (M,128) x (128,128) MXU matmuls.
    x_k = k_ref[...].reshape(bt * lk, d)
    x_v = v_ref[...].reshape(bt * lk, d)
    k = jnp.dot(x_k, wk_ref[...], preferred_element_type=jnp.float32) + vec_ref[1:2, :]
    v = jnp.dot(x_v, wv_ref[...], preferred_element_type=jnp.float32) + vec_ref[2:3, :]
    kh = split_heads(k.astype(cdt), lk)          # (NHEAD*bt, lk, hd)
    vh = split_heads(v.astype(cdt), lk)          # (NHEAD*bt, lk, hd)
    qh = q_sc[...]                               # (NHEAD*bt, lq, hd), pre-scaled

    # Scores: one batched dot over the fused (head, batch) axis.
    s = jnp.einsum('bqd,bkd->bqk', qh, kh,
                   preferred_element_type=jnp.float32)          # (NHEAD*bt, lq, lk)

    # Online softmax, unnormalized (normalization deferred to after PV).
    m_prev = m_sc[...]
    m_new = jnp.maximum(m_prev, jnp.max(s, axis=-1, keepdims=True))
    alpha = jnp.exp(m_prev - m_new)
    p = jnp.exp(s - m_new)
    l_sc[...] = alpha * l_sc[...] + jnp.sum(p, axis=-1, keepdims=True)
    pv = jnp.einsum('bqk,bkd->bqd', p.astype(cdt), vh,
                    preferred_element_type=jnp.float32)         # (NHEAD*bt, lq, hd)
    acc_sc[...] = alpha * acc_sc[...] + pv
    m_sc[...] = m_new

    @pl.when(kv == n_kv - 1)
    def _():
        # Normalize after PV: scale the (rows, head_dim) accumulator, not the probs.
        o_all = acc_sc[...] * pl.reciprocal(l_sc[...], approx=True)
        o_all = o_all.astype(cdt)
        # Re-concatenate heads on lanes once -> single K=128 output-projection matmul.
        o_cat = jnp.concatenate(
            [o_all[h * bt:(h + 1) * bt].reshape(mq, HEAD_DIM) for h in range(NHEAD)],
            axis=-1)                                            # (mq, d)
        attn = jnp.dot(o_cat, wo_ref[...],
                       preferred_element_type=jnp.float32) + vec_ref[3:4, :]

        # Residual uses the ORIGINAL f32 Q; LayerNorm (biased variance, eps=1e-5) in f32.
        res = q_ref[...].reshape(mq, d) + attn
        mean = jnp.mean(res, axis=-1, keepdims=True)
        cen = res - mean
        var = jnp.mean(cen * cen, axis=-1, keepdims=True)
        out = cen * lax.rsqrt(var + LN_EPS) * vec_ref[4:5, :] + vec_ref[5:6, :]
        o_ref[...] = out.reshape(bt, lq, d).astype(o_ref.dtype)


def _pick_b_tile(B, Lq, target_rows=512, min_grid=2):
    """Batch tile targeting ~target_rows fused rows, keeping >= min_grid batch steps."""
    bt = max(1, target_rows // max(Lq, 1))
    bt = min(bt, B)
    if B >= min_grid:
        # Keep at least `min_grid` grid steps so v7x's 2 TensorCores both get work.
        bt = min(bt, (B + min_grid - 1) // min_grid)
    return int(max(1, bt))


def _pick_lk_tile(Lk, max_tile=256):
    """Lk tile: full Lk if small, else the largest divisor <= max_tile that is a
    multiple of 8 (BlockSpec constraint). Falls back to untiled if none exists."""
    if Lk <= max_tile:
        return Lk
    for t in range(max_tile, 0, -1):
        if Lk % t == 0 and t % 8 == 0:
            return t
    return Lk


def cross_attention_pallas(Q, K, V, params, *, compute_dtype=jnp.bfloat16,
                           out_dtype=None, b_tile=None, lk_tile=None):
    B, Lq, d = Q.shape
    Bk, Lk, dk = K.shape
    assert d == D_MODEL and dk == D_MODEL and Bk == B and K.shape == V.shape

    wq_t, wk_t, wv_t, wo_t, bq, bk, bv, bo, gamma, beta = params
    cdt = compute_dtype
    if out_dtype is None:
        out_dtype = Q.dtype

    if b_tile is None:
        b_tile = _pick_b_tile(B, Lq)
    if lk_tile is None:
        lk_tile = _pick_lk_tile(Lk)
    assert Lk % lk_tile == 0

    # Pad batch to a multiple of b_tile (padded rows computed then dropped: no NaNs,
    # zero Q/K/V rows normalize to finite values).
    B_pad = ((B + b_tile - 1) // b_tile) * b_tile
    if B_pad != B:
        pad = ((0, B_pad - B), (0, 0), (0, 0))
        Qp, Kp, Vp = jnp.pad(Q, pad), jnp.pad(K, pad), jnp.pad(V, pad)
    else:
        Qp, Kp, Vp = Q, K, V

    num_b = B_pad // b_tile
    num_kv = Lk // lk_tile

    scale = 1.0 / math.sqrt(HEAD_DIM)
    # Fold the 1/sqrt(head_dim) scale into the constant Wq / bq (one-time, outside kernel).
    wq_c = (wq_t * scale).astype(cdt)
    wk_c = wk_t.astype(cdt)
    wv_c = wv_t.astype(cdt)
    wo_c = wo_t.astype(cdt)
    # Pack the six (1, d) bias / LayerNorm vectors into one (6, d) f32 input.
    vecs = jnp.concatenate([bq * scale, bk, bv, bo, gamma, beta], axis=0).astype(jnp.float32)

    Qf = Qp.astype(jnp.float32)    # residual path stays f32
    Kc = Kp.astype(cdt)
    Vc = Vp.astype(cdt)

    q_spec = pl.BlockSpec((b_tile, Lq, d), lambda b, kv: (b, 0, 0))
    kv_spec = pl.BlockSpec((b_tile, lk_tile, d), lambda b, kv: (b, kv, 0))
    w_spec = pl.BlockSpec((d, d), lambda b, kv: (0, 0))
    vec_spec = pl.BlockSpec((6, d), lambda b, kv: (0, 0))
    out_spec = pl.BlockSpec((b_tile, Lq, d), lambda b, kv: (b, 0, 0))

    out = pl.pallas_call(
        _cross_attn_kernel,
        out_shape=jax.ShapeDtypeStruct((B_pad, Lq, d), out_dtype),
        grid_spec=pltpu.PrefetchScalarGridSpec(
            num_scalar_prefetch=0,
            grid=(num_b, num_kv),
            in_specs=[q_spec, kv_spec, kv_spec,
                      w_spec, w_spec, w_spec, w_spec,
                      vec_spec],
            out_specs=out_spec,
            scratch_shapes=[
                pltpu.VMEM((NHEAD * b_tile, Lq, HEAD_DIM), cdt),          # cached q heads
                pltpu.VMEM((NHEAD * b_tile, Lq, 1), jnp.float32),         # running max m
                pltpu.VMEM((NHEAD * b_tile, Lq, 1), jnp.float32),         # running sum l
                pltpu.VMEM((NHEAD * b_tile, Lq, HEAD_DIM), jnp.float32),  # PV accumulator
            ]),
        compiler_params=pltpu.CompilerParams(
            dimension_semantics=("parallel", "arbitrary"),
            vmem_limit_bytes=48 * 1024 * 1024),
    )(Qf, Kc, Vc, wq_c, wk_c, wv_c, wo_c, vecs)

    return out[:B] if B_pad != B else out


def cross_attention_ref(Q, K, V, params):
    """Pure-JAX f32 reference mirroring torch nn.MultiheadAttention + LayerNorm."""
    wq_t, wk_t, wv_t, wo_t, bq, bk, bv, bo, gamma, beta = params
    B, Lq, d = Q.shape
    Lk = K.shape[1]

    q = Q @ wq_t + bq
    k = K @ wk_t + bk
    v = V @ wv_t + bv

    def split_heads(x, L):
        return x.reshape(B, L, NHEAD, HEAD_DIM).transpose(0, 2, 1, 3)

    qh = split_heads(q, Lq) / math.sqrt(HEAD_DIM)
    kh = split_heads(k, Lk)
    vh = split_heads(v, Lk)

    s = jnp.einsum("bhqd,bhkd->bhqk", qh, kh)
    p = jax.nn.softmax(s, axis=-1)
    o = jnp.einsum("bhqk,bhkd->bhqd", p, vh)
    o = o.transpose(0, 2, 1, 3).reshape(B, Lq, d)
    attn_out = o @ wo_t + bo

    res = Q + attn_out
    mean = jnp.mean(res, axis=-1, keepdims=True)
    var = jnp.mean((res - mean) ** 2, axis=-1, keepdims=True)
    return (res - mean) * lax.rsqrt(var + LN_EPS) * gamma + beta


def make_params(key):
    """Deterministic synthetic weights with nn.MultiheadAttention shapes (pre-transposed)."""
    ks = jax.random.split(key, 8)
    wq = 0.05 * jax.random.normal(ks[0], (D_MODEL, D_MODEL), jnp.float32)
    wk = 0.05 * jax.random.normal(ks[1], (D_MODEL, D_MODEL), jnp.float32)
    wv = 0.05 * jax.random.normal(ks[2], (D_MODEL, D_MODEL), jnp.float32)
    wo = 0.05 * jax.random.normal(ks[3], (D_MODEL, D_MODEL), jnp.float32)
    bq = 0.05 * jax.random.normal(ks[4], (1, D_MODEL), jnp.float32)
    bk = 0.05 * jax.random.normal(ks[5], (1, D_MODEL), jnp.float32)
    bv = 0.05 * jax.random.normal(ks[6], (1, D_MODEL), jnp.float32)
    bo = 0.05 * jax.random.normal(ks[7], (1, D_MODEL), jnp.float32)
    gamma = jnp.ones((1, D_MODEL), jnp.float32)
    beta = jnp.zeros((1, D_MODEL), jnp.float32)
    return (wq, wk, wv, wo, bq, bk, bv, bo, gamma, beta)


if __name__ == "__main__":
    key = jax.random.PRNGKey(0)
    kq, kk, kvv, kp = jax.random.split(key, 4)

    B, Lq, Lk = 2, 8, 8
    Q = jax.random.normal(kq, (B, Lq, D_MODEL), jnp.float32)
    K = jax.random.normal(kk, (B, Lk, D_MODEL), jnp.float32)
    V = jax.random.normal(kvv, (B, Lk, D_MODEL), jnp.float32)
    params = make_params(kp)

    ref = cross_attention_ref(Q, K, V, params)

    # f32 MXU path: tight-ish check (tolerance covers the intentional approx reciprocal).
    out_f32 = jax.block_until_ready(
        cross_attention_pallas(Q, K, V, params, compute_dtype=jnp.float32))
    assert out_f32.shape == (B, Lq, D_MODEL)
    assert jnp.allclose(out_f32, ref, rtol=1e-2, atol=1e-2), "f32 path mismatch vs reference"

    # Default bf16 MXU path (v6e/v7x guidance): f32 accumulate, bf16-level tolerance.
    out_bf16 = jax.block_until_ready(cross_attention_pallas(Q, K, V, params))
    assert out_bf16.shape == (B, Lq, D_MODEL)
    assert jnp.allclose(out_bf16.astype(jnp.float32), ref, rtol=5e-2, atol=5e-2), \
        "bf16 path mismatch vs reference"

    print("KERNEL_OK")
</pallas_src>

<mosaic_0001>
module attributes {stable_mosaic.version = 11 : i64} {
  func.func @_cross_attn_kernel(%arg0: i32, %arg1: i32, %arg2: memref<1x8x128xf32, #tpu.memory_space<vmem>>, %arg3: memref<1x8x128xf32, #tpu.memory_space<vmem>>, %arg4: memref<1x8x128xf32, #tpu.memory_space<vmem>>, %arg5: memref<128x128xf32, #tpu.memory_space<vmem>>, %arg6: memref<128x128xf32, #tpu.memory_space<vmem>>, %arg7: memref<128x128xf32, #tpu.memory_space<vmem>>, %arg8: memref<128x128xf32, #tpu.memory_space<vmem>>, %arg9: memref<6x128xf32, #tpu.memory_space<vmem>>, %arg10: memref<1x8x128xf32, #tpu.memory_space<vmem>>, %arg11: memref<4x8x32xf32, #tpu.memory_space<vmem>>, %arg12: memref<4x8x1xf32, #tpu.memory_space<vmem>>, %arg13: memref<4x8x1xf32, #tpu.memory_space<vmem>>, %arg14: memref<4x8x32xf32, #tpu.memory_space<vmem>>) attributes {dimension_semantics = [#tpu.dimension_semantics<parallel>, #tpu.dimension_semantics<arbitrary>], iteration_bounds = array<i64: 2, 1>, scalar_prefetch = 0 : i64, scratch_operands = 4 : i64, tpu.core_type = #tpu.core_type<tc>, window_params = [{transform_indices = @transform_0, window_bounds = array<i64: 1, 8, 128>}, {transform_indices = @transform_1, window_bounds = array<i64: 1, 8, 128>}, {transform_indices = @transform_2, window_bounds = array<i64: 1, 8, 128>}, {pipeline_mode = #tpu.pipeline_mode<synchronous>, transform_indices = @transform_3, window_bounds = array<i64: 128, 128>}, {pipeline_mode = #tpu.pipeline_mode<synchronous>, transform_indices = @transform_4, window_bounds = array<i64: 128, 128>}, {pipeline_mode = #tpu.pipeline_mode<synchronous>, transform_indices = @transform_5, window_bounds = array<i64: 128, 128>}, {pipeline_mode = #tpu.pipeline_mode<synchronous>, transform_indices = @transform_6, window_bounds = array<i64: 128, 128>}, {pipeline_mode = #tpu.pipeline_mode<synchronous>, transform_indices = @transform_7, window_bounds = array<i64: 6, 128>}, {transform_indices = @transform_8, window_bounds = array<i64: 1, 8, 128>}]} {
    %c0_i32 = arith.constant 0 : i32
    %0 = arith.cmpi eq, %arg1, %c0_i32 : i32
    %1 = arith.extui %0 : i1 to i32
    %c0_i32_0 = arith.constant 0 : i32
    %2 = arith.cmpi ne, %1, %c0_i32_0 : i32
    scf.if %2 {
      %c0_40 = arith.constant 0 : index
      %c0_41 = arith.constant 0 : index
      %c0_42 = arith.constant 0 : index
      %62 = vector.load %arg2[%c0_40, %c0_41, %c0_42] : memref<1x8x128xf32, #tpu.memory_space<vmem>>, vector<1x8x128xf32>
      %63 = vector.shape_cast %62 : vector<1x8x128xf32> to vector<8x128xf32>
      %c0_43 = arith.constant 0 : index
      %c0_44 = arith.constant 0 : index
      %64 = vector.load %arg5[%c0_43, %c0_44] : memref<128x128xf32, #tpu.memory_space<vmem>>, vector<128x128xf32>
      %cst_45 = arith.constant dense<0.000000e+00> : vector<8x128xf32>
      %65 = tpu.matmul %63, %64, %cst_45 {dimension_numbers = #tpu.dot_dimension_numbers<[1], [0], [0], [1], [0, 0, 1, 1], [], []>} : vector<8x128xf32>, vector<128x128xf32>, vector<8x128xf32> -> vector<8x128xf32>
      %c0_46 = arith.constant 0 : index
      %c0_47 = arith.constant 0 : index
      %66 = vector.load %arg9[%c0_46, %c0_47] : memref<6x128xf32, #tpu.memory_space<vmem>>, vector<1x128xf32>
      %67 = vector.broadcast %66 : vector<1x128xf32> to vector<8x128xf32>
      %68 = arith.addf %65, %67 : vector<8x128xf32>
      %69 = vector.extract_strided_slice %68 {offsets = [0, 0], sizes = [8, 32], strides = [1, 1]} : vector<8x128xf32> to vector<8x32xf32>
      %70 = vector.shape_cast %69 : vector<8x32xf32> to vector<1x8x32xf32>
      %71 = vector.extract_strided_slice %68 {offsets = [0, 32], sizes = [8, 32], strides = [1, 1]} : vector<8x128xf32> to vector<8x32xf32>
      %72 = vector.shape_cast %71 : vector<8x32xf32> to vector<1x8x32xf32>
      %73 = vector.extract_strided_slice %68 {offsets = [0, 64], sizes = [8, 32], strides = [1, 1]} : vector<8x128xf32> to vector<8x32xf32>
      %74 = vector.shape_cast %73 : vector<8x32xf32> to vector<1x8x32xf32>
      %75 = vector.extract_strided_slice %68 {offsets = [0, 96], sizes = [8, 32], strides = [1, 1]} : vector<8x128xf32> to vector<8x32xf32>
      %76 = vector.shape_cast %75 : vector<8x32xf32> to vector<1x8x32xf32>
      %77 = tpu.concatenate %70, %72, %74, %76 in 0 : vector<1x8x32xf32>, vector<1x8x32xf32>, vector<1x8x32xf32>, vector<1x8x32xf32> -> vector<4x8x32xf32>
      %c0_48 = arith.constant 0 : index
      %c0_49 = arith.constant 0 : index
      %c0_50 = arith.constant 0 : index
      %78 = vector.load %arg11[%c0_48, %c0_49, %c0_50] : memref<4x8x32xf32, #tpu.memory_space<vmem>>, vector<4x8x32xf32>
      tpu.vector_store %arg11[%c0_48, %c0_49, %c0_50], %77 {strides = array<i32>} : memref<4x8x32xf32, #tpu.memory_space<vmem>>, vector<4x8x32xf32>,
      %cst_51 = arith.constant 0xFF800000 : f32
      %79 = vector.broadcast %cst_51 : f32 to vector<4x8x1xf32>
      %c0_52 = arith.constant 0 : index
      %c0_53 = arith.constant 0 : index
      %c0_54 = arith.constant 0 : index
      %80 = vector.load %arg12[%c0_52, %c0_53, %c0_54] : memref<4x8x1xf32, #tpu.memory_space<vmem>>, vector<4x8x1xf32>
      tpu.vector_store %arg12[%c0_52, %c0_53, %c0_54], %79 {strides = array<i32>} : memref<4x8x1xf32, #tpu.memory_space<vmem>>, vector<4x8x1xf32>,
      %cst_55 = arith.constant 0.000000e+00 : f32
      %81 = vector.broadcast %cst_55 : f32 to vector<4x8x1xf32>
      %c0_56 = arith.constant 0 : index
      %c0_57 = arith.constant 0 : index
      %c0_58 = arith.constant 0 : index
      %82 = vector.load %arg13[%c0_56, %c0_57, %c0_58] : memref<4x8x1xf32, #tpu.memory_space<vmem>>, vector<4x8x1xf32>
      tpu.vector_store %arg13[%c0_56, %c0_57, %c0_58], %81 {strides = array<i32>} : memref<4x8x1xf32, #tpu.memory_space<vmem>>, vector<4x8x1xf32>,
      %cst_59 = arith.constant 0.000000e+00 : f32
      %83 = vector.broadcast %cst_59 : f32 to vector<4x8x32xf32>
      %c0_60 = arith.constant 0 : index
      %c0_61 = arith.constant 0 : index
      %c0_62 = arith.constant 0 : index
      %84 = vector.load %arg14[%c0_60, %c0_61, %c0_62] : memref<4x8x32xf32, #tpu.memory_space<vmem>>, vector<4x8x32xf32>
      tpu.vector_store %arg14[%c0_60, %c0_61, %c0_62], %83 {strides = array<i32>} : memref<4x8x32xf32, #tpu.memory_space<vmem>>, vector<4x8x32xf32>,
    } else {
    }
    %c0 = arith.constant 0 : index
    %c0_1 = arith.constant 0 : index
    %c0_2 = arith.constant 0 : index
    %3 = vector.load %arg3[%c0, %c0_1, %c0_2] : memref<1x8x128xf32, #tpu.memory_space<vmem>>, vector<1x8x128xf32>
    %4 = vector.shape_cast %3 : vector<1x8x128xf32> to vector<8x128xf32>
    %c0_3 = arith.constant 0 : index
    %c0_4 = arith.constant 0 : index
    %c0_5 = arith.constant 0 : index
    %5 = vector.load %arg4[%c0_3, %c0_4, %c0_5] : memref<1x8x128xf32, #tpu.memory_space<vmem>>, vector<1x8x128xf32>
    %6 = vector.shape_cast %5 : vector<1x8x128xf32> to vector<8x128xf32>
    %c0_6 = arith.constant 0 : index
    %c0_7 = arith.constant 0 : index
    %7 = vector.load %arg6[%c0_6, %c0_7] : memref<128x128xf32, #tpu.memory_space<vmem>>, vector<128x128xf32>
    %cst = arith.constant dense<0.000000e+00> : vector<8x128xf32>
    %8 = tpu.matmul %4, %7, %cst {dimension_numbers = #tpu.dot_dimension_numbers<[1], [0], [0], [1], [0, 0, 1, 1], [], []>} : vector<8x128xf32>, vector<128x128xf32>, vector<8x128xf32> -> vector<8x128xf32>
    %c1 = arith.constant 1 : index
    %c0_8 = arith.constant 0 : index
    %9 = vector.load %arg9[%c1, %c0_8] : memref<6x128xf32, #tpu.memory_space<vmem>>, vector<1x128xf32>
    %10 = vector.broadcast %9 : vector<1x128xf32> to vector<8x128xf32>
    %11 = arith.addf %8, %10 : vector<8x128xf32>
    %c0_9 = arith.constant 0 : index
    %c0_10 = arith.constant 0 : index
    %12 = vector.load %arg7[%c0_9, %c0_10] : memref<128x128xf32, #tpu.memory_space<vmem>>, vector<128x128xf32>
    %cst_11 = arith.constant dense<0.000000e+00> : vector<8x128xf32>
    %13 = tpu.matmul %6, %12, %cst_11 {dimension_numbers = #tpu.dot_dimension_numbers<[1], [0], [0], [1], [0, 0, 1, 1], [], []>} : vector<8x128xf32>, vector<128x128xf32>, vector<8x128xf32> -> vector<8x128xf32>
    %c2 = arith.constant 2 : index
    %c0_12 = arith.constant 0 : index
    %14 = vector.load %arg9[%c2, %c0_12] : memref<6x128xf32, #tpu.memory_space<vmem>>, vector<1x128xf32>
    %15 = vector.broadcast %14 : vector<1x128xf32> to vector<8x128xf32>
    %16 = arith.addf %13, %15 : vector<8x128xf32>
    %17 = vector.extract_strided_slice %11 {offsets = [0, 0], sizes = [8, 32], strides = [1, 1]} : vector<8x128xf32> to vector<8x32xf32>
    %18 = vector.shape_cast %17 : vector<8x32xf32> to vector<1x8x32xf32>
    %19 = vector.extract_strided_slice %11 {offsets = [0, 32], sizes = [8, 32], strides = [1, 1]} : vector<8x128xf32> to vector<8x32xf32>
    %20 = vector.shape_cast %19 : vector<8x32xf32> to vector<1x8x32xf32>
    %21 = vector.extract_strided_slice %11 {offsets = [0, 64], sizes = [8, 32], strides = [1, 1]} : vector<8x128xf32> to vector<8x32xf32>
    %22 = vector.shape_cast %21 : vector<8x32xf32> to vector<1x8x32xf32>
    %23 = vector.extract_strided_slice %11 {offsets = [0, 96], sizes = [8, 32], strides = [1, 1]} : vector<8x128xf32> to vector<8x32xf32>
    %24 = vector.shape_cast %23 : vector<8x32xf32> to vector<1x8x32xf32>
    %25 = tpu.concatenate %18, %20, %22, %24 in 0 : vector<1x8x32xf32>, vector<1x8x32xf32>, vector<1x8x32xf32>, vector<1x8x32xf32> -> vector<4x8x32xf32>
    %26 = vector.extract_strided_slice %16 {offsets = [0, 0], sizes = [8, 32], strides = [1, 1]} : vector<8x128xf32> to vector<8x32xf32>
    %27 = vector.shape_cast %26 : vector<8x32xf32> to vector<1x8x32xf32>
    %28 = vector.extract_strided_slice %16 {offsets = [0, 32], sizes = [8, 32], strides = [1, 1]} : vector<8x128xf32> to vector<8x32xf32>
    %29 = vector.shape_cast %28 : vector<8x32xf32> to vector<1x8x32xf32>
    %30 = vector.extract_strided_slice %16 {offsets = [0, 64], sizes = [8, 32], strides = [1, 1]} : vector<8x128xf32> to vector<8x32xf32>
    %31 = vector.shape_cast %30 : vector<8x32xf32> to vector<1x8x32xf32>
    %32 = vector.extract_strided_slice %16 {offsets = [0, 96], sizes = [8, 32], strides = [1, 1]} : vector<8x128xf32> to vector<8x32xf32>
    %33 = vector.shape_cast %32 : vector<8x32xf32> to vector<1x8x32xf32>
    %34 = tpu.concatenate %27, %29, %31, %33 in 0 : vector<1x8x32xf32>, vector<1x8x32xf32>, vector<1x8x32xf32>, vector<1x8x32xf32> -> vector<4x8x32xf32>
    %c0_13 = arith.constant 0 : index
    %c0_14 = arith.constant 0 : index
    %c0_15 = arith.constant 0 : index
    %35 = vector.load %arg11[%c0_13, %c0_14, %c0_15] : memref<4x8x32xf32, #tpu.memory_space<vmem>>, vector<4x8x32xf32>
    "tpu.trace_start"() <{level = 10 : i32, message = "bqd,bkd->bqk"}> : () -> ()
    %cst_16 = arith.constant dense<0.000000e+00> : vector<4x8x8xf32>
    %36 = tpu.matmul %35, %25, %cst_16 {dimension_numbers = #tpu.dot_dimension_numbers<[2], [2], [1], [1], [0, 0, 0, 1, 1, 1], [0], [0]>} : vector<4x8x32xf32>, vector<4x8x32xf32>, vector<4x8x8xf32> -> vector<4x8x8xf32>
    "tpu.trace_stop"() : () -> ()
    %c0_17 = arith.constant 0 : index
    %c0_18 = arith.constant 0 : index
    %c0_19 = arith.constant 0 : index
    %37 = vector.load %arg12[%c0_17, %c0_18, %c0_19] : memref<4x8x1xf32, #tpu.memory_space<vmem>>, vector<4x8x1xf32>
    %cst_20 = arith.constant dense<0xFF800000> : vector<4x8xf32>
    %38 = vector.multi_reduction <maximumf>, %36, %cst_20 [2] : vector<4x8x8xf32> to vector<4x8xf32>
    %39 = vector.shape_cast %38 : vector<4x8xf32> to vector<4x8x1xf32>
    %40 = arith.maximumf %37, %39 : vector<4x8x1xf32>
    %41 = arith.subf %37, %40 : vector<4x8x1xf32>
    %42 = math.exp %41 : vector<4x8x1xf32>
    %43 = vector.broadcast %40 : vector<4x8x1xf32> to vector<4x8x8xf32>
    %44 = arith.subf %36, %43 : vector<4x8x8xf32>
    %45 = math.exp %44 : vector<4x8x8xf32>
    %c0_21 = arith.constant 0 : index
    %c0_22 = arith.constant 0 : index
    %c0_23 = arith.constant 0 : index
    %46 = vector.load %arg13[%c0_21, %c0_22, %c0_23] : memref<4x8x1xf32, #tpu.memory_space<vmem>>, vector<4x8x1xf32>
    %47 = arith.mulf %42, %46 : vector<4x8x1xf32>
    %cst_24 = arith.constant dense<0.000000e+00> : vector<4x8xf32>
    %48 = vector.multi_reduction <add>, %45, %cst_24 [2] : vector<4x8x8xf32> to vector<4x8xf32>
    %49 = vector.shape_cast %48 : vector<4x8xf32> to vector<4x8x1xf32>
    %50 = arith.addf %47, %49 : vector<4x8x1xf32>
    %c0_25 = arith.constant 0 : index
    %c0_26 = arith.constant 0 : index
    %c0_27 = arith.constant 0 : index
    %51 = vector.load %arg13[%c0_25, %c0_26, %c0_27] : memref<4x8x1xf32, #tpu.memory_space<vmem>>, vector<4x8x1xf32>
    tpu.vector_store %arg13[%c0_25, %c0_26, %c0_27], %50 {strides = array<i32>} : memref<4x8x1xf32, #tpu.memory_space<vmem>>, vector<4x8x1xf32>,
    "tpu.trace_start"() <{level = 10 : i32, message = "bqk,bkd->bqd"}> : () -> ()
    %cst_28 = arith.constant dense<0.000000e+00> : vector<4x8x32xf32>
    %52 = tpu.matmul %45, %34, %cst_28 {dimension_numbers = #tpu.dot_dimension_numbers<[2], [1], [1], [2], [0, 0, 0, 1, 1, 2], [0], [0]>} : vector<4x8x8xf32>, vector<4x8x32xf32>, vector<4x8x32xf32> -> vector<4x8x32xf32>
    "tpu.trace_stop"() : () -> ()
    %c0_29 = arith.constant 0 : index
    %c0_30 = arith.constant 0 : index
    %c0_31 = arith.constant 0 : index
    %53 = vector.load %arg14[%c0_29, %c0_30, %c0_31] : memref<4x8x32xf32, #tpu.memory_space<vmem>>, vector<4x8x32xf32>
    %54 = vector.broadcast %42 : vector<4x8x1xf32> to vector<4x8x32xf32>
    %55 = arith.mulf %54, %53 : vector<4x8x32xf32>
    %56 = arith.addf %55, %52 : vector<4x8x32xf32>
    %c0_32 = arith.constant 0 : index
    %c0_33 = arith.constant 0 : index
    %c0_34 = arith.constant 0 : index
    %57 = vector.load %arg14[%c0_32, %c0_33, %c0_34] : memref<4x8x32xf32, #tpu.memory_space<vmem>>, vector<4x8x32xf32>
    tpu.vector_store %arg14[%c0_32, %c0_33, %c0_34], %56 {strides = array<i32>} : memref<4x8x32xf32, #tpu.memory_space<vmem>>, vector<4x8x32xf32>,
    %c0_35 = arith.constant 0 : index
    %c0_36 = arith.constant 0 : index
    %c0_37 = arith.constant 0 : index
    %58 = vector.load %arg12[%c0_35, %c0_36, %c0_37] : memref<4x8x1xf32, #tpu.memory_space<vmem>>, vector<4x8x1xf32>
    tpu.vector_store %arg12[%c0_35, %c0_36, %c0_37], %40 {strides = array<i32>} : memref<4x8x1xf32, #tpu.memory_space<vmem>>, vector<4x8x1xf32>,
    %c0_i32_38 = arith.constant 0 : i32
    %59 = arith.cmpi eq, %arg1, %c0_i32_38 : i32
    %60 = arith.extui %59 : i1 to i32
    %c0_i32_39 = arith.constant 0 : i32
    %61 = arith.cmpi ne, %60, %c0_i32_39 : i32
    scf.if %61 {
      %c0_40 = arith.constant 0 : index
      %c0_41 = arith.constant 0 : index
      %c0_42 = arith.constant 0 : index
      %62 = vector.load %arg14[%c0_40, %c0_41, %c0_42] : memref<4x8x32xf32, #tpu.memory_space<vmem>>, vector<4x8x32xf32>
      %c0_43 = arith.constant 0 : index
      %c0_44 = arith.constant 0 : index
      %c0_45 = arith.constant 0 : index
      %63 = vector.load %arg13[%c0_43, %c0_44, %c0_45] : memref<4x8x1xf32, #tpu.memory_space<vmem>>, vector<4x8x1xf32>
      %64 = tpu.reciprocal %63 {approx = true} : vector<4x8x1xf32> -> vector<4x8x1xf32>
      %65 = vector.broadcast %64 : vector<4x8x1xf32> to vector<4x8x32xf32>
      %66 = arith.mulf %62, %65 : vector<4x8x32xf32>
      %67 = vector.extract_strided_slice %66 {offsets = [0, 0, 0], sizes = [1, 8, 32], strides = [1, 1, 1]} : vector<4x8x32xf32> to vector<1x8x32xf32>
      %68 = vector.shape_cast %67 : vector<1x8x32xf32> to vector<8x32xf32>
      %69 = vector.extract_strided_slice %66 {offsets = [1, 0, 0], sizes = [1, 8, 32], strides = [1, 1, 1]} : vector<4x8x32xf32> to vector<1x8x32xf32>
      %70 = vector.shape_cast %69 : vector<1x8x32xf32> to vector<8x32xf32>
      %71 = vector.extract_strided_slice %66 {offsets = [2, 0, 0], sizes = [1, 8, 32], strides = [1, 1, 1]} : vector<4x8x32xf32> to vector<1x8x32xf32>
      %72 = vector.shape_cast %71 : vector<1x8x32xf32> to vector<8x32xf32>
      %73 = vector.extract_strided_slice %66 {offsets = [3, 0, 0], sizes = [1, 8, 32], strides = [1, 1, 1]} : vector<4x8x32xf32> to vector<1x8x32xf32>
      %74 = vector.shape_cast %73 : vector<1x8x32xf32> to vector<8x32xf32>
      %75 = tpu.concatenate %68, %70, %72, %74 in 1 : vector<8x32xf32>, vector<8x32xf32>, vector<8x32xf32>, vector<8x32xf32> -> vector<8x128xf32>
      %c0_46 = arith.constant 0 : index
      %c0_47 = arith.constant 0 : index
      %76 = vector.load %arg8[%c0_46, %c0_47] : memref<128x128xf32, #tpu.memory_space<vmem>>, vector<128x128xf32>
      %cst_48 = arith.constant dense<0.000000e+00> : vector<8x128xf32>
      %77 = tpu.matmul %75, %76, %cst_48 {dimension_numbers = #tpu.dot_dimension_numbers<[1], [0], [0], [1], [0, 0, 1, 1], [], []>} : vector<8x128xf32>, vector<128x128xf32>, vector<8x128xf32> -> vector<8x128xf32>
      %c3 = arith.constant 3 : index
      %c0_49 = arith.constant 0 : index
      %78 = vector.load %arg9[%c3, %c0_49] : memref<6x128xf32, #tpu.memory_space<vmem>>, vector<1x128xf32>
      %79 = vector.broadcast %78 : vector<1x128xf32> to vector<8x128xf32>
      %80 = arith.addf %77, %79 : vector<8x128xf32>
      %c0_50 = arith.constant 0 : index
      %c0_51 = arith.constant 0 : index
      %c0_52 = arith.constant 0 : index
      %81 = vector.load %arg2[%c0_50, %c0_51, %c0_52] : memref<1x8x128xf32, #tpu.memory_space<vmem>>, vector<1x8x128xf32>
      %82 = vector.shape_cast %81 : vector<1x8x128xf32> to vector<8x128xf32>
      %83 = arith.addf %82, %80 : vector<8x128xf32>
      %cst_53 = arith.constant dense<0.000000e+00> : vector<8xf32>
      %84 = vector.multi_reduction <add>, %83, %cst_53 [1] : vector<8x128xf32> to vector<8xf32>
      %85 = vector.shape_cast %84 : vector<8xf32> to vector<8x1xf32>
      %cst_54 = arith.constant 1.280000e+02 : f32
      %86 = vector.broadcast %cst_54 : f32 to vector<8x1xf32>
      %87 = arith.divf %85, %86 : vector<8x1xf32>
      %88 = vector.broadcast %87 : vector<8x1xf32> to vector<8x128xf32>
      %89 = arith.subf %83, %88 : vector<8x128xf32>
      %90 = arith.mulf %89, %89 : vector<8x128xf32>
      %cst_55 = arith.constant dense<0.000000e+00> : vector<8xf32>
      %91 = vector.multi_reduction <add>, %90, %cst_55 [1] : vector<8x128xf32> to vector<8xf32>
      %92 = vector.shape_cast %91 : vector<8xf32> to vector<8x1xf32>
      %cst_56 = arith.constant 1.280000e+02 : f32
      %93 = vector.broadcast %cst_56 : f32 to vector<8x1xf32>
      %94 = arith.divf %92, %93 : vector<8x1xf32>
      %cst_57 = arith.constant 9.99999974E-6 : f32
      %95 = vector.broadcast %cst_57 : f32 to vector<8x1xf32>
      %96 = arith.addf %94, %95 : vector<8x1xf32>
      %97 = math.rsqrt %96 : vector<8x1xf32>
      %98 = vector.broadcast %97 : vector<8x1xf32> to vector<8x128xf32>
      %99 = arith.mulf %89, %98 : vector<8x128xf32>
      %c4 = arith.constant 4 : index
      %c0_58 = arith.constant 0 : index
      %100 = vector.load %arg9[%c4, %c0_58] : memref<6x128xf32, #tpu.memory_space<vmem>>, vector<1x128xf32>
      %101 = vector.broadcast %100 : vector<1x128xf32> to vector<8x128xf32>
      %102 = arith.mulf %99, %101 : vector<8x128xf32>
      %c5 = arith.constant 5 : index
      %c0_59 = arith.constant 0 : index
      %103 = vector.load %arg9[%c5, %c0_59] : memref<6x128xf32, #tpu.memory_space<vmem>>, vector<1x128xf32>
      %104 = vector.broadcast %103 : vector<1x128xf32> to vector<8x128xf32>
      %105 = arith.addf %102, %104 : vector<8x128xf32>
      %106 = vector.shape_cast %105 : vector<8x128xf32> to vector<1x8x128xf32>
      %c0_60 = arith.constant 0 : index
      %c0_61 = arith.constant 0 : index
      %c0_62 = arith.constant 0 : index
      %107 = vector.load %arg10[%c0_60, %c0_61, %c0_62] : memref<1x8x128xf32, #tpu.memory_space<vmem>>, vector<1x8x128xf32>
      tpu.vector_store %arg10[%c0_60, %c0_61, %c0_62], %106 {strides = array<i32>} : memref<1x8x128xf32, #tpu.memory_space<vmem>>, vector<1x8x128xf32>,
    } else {
    }
    return
  }
  func.func @transform_0(%arg0: i32, %arg1: i32) -> (i32, i32, i32) {
    %c0_i32 = arith.constant 0 : i32
    %c0_i32_0 = arith.constant 0 : i32
    %c0_i32_1 = arith.constant 0 : i32
    return %arg0, %c0_i32, %c0_i32_0 : i32, i32, i32
  }
  func.func @transform_1(%arg0: i32, %arg1: i32) -> (i32, i32, i32) {
    %c0_i32 = arith.constant 0 : i32
    %c0_i32_0 = arith.constant 0 : i32
    return %arg0, %arg1, %c0_i32 : i32, i32, i32
  }
  func.func @transform_2(%arg0: i32, %arg1: i32) -> (i32, i32, i32) {
    %c0_i32 = arith.constant 0 : i32
    %c0_i32_0 = arith.constant 0 : i32
    return %arg0, %arg1, %c0_i32 : i32, i32, i32
  }
  func.func @transform_3(%arg0: i32, %arg1: i32) -> (i32, i32) {
    %c0_i32 = arith.constant 0 : i32
    %c0_i32_0 = arith.constant 0 : i32
    %c0_i32_1 = arith.constant 0 : i32
    return %c0_i32, %c0_i32_0 : i32, i32
  }
  func.func @transform_4(%arg0: i32, %arg1: i32) -> (i32, i32) {
    %c0_i32 = arith.constant 0 : i32
    %c0_i32_0 = arith.constant 0 : i32
    %c0_i32_1 = arith.constant 0 : i32
    return %c0_i32, %c0_i32_0 : i32, i32
  }
  func.func @transform_5(%arg0: i32, %arg1: i32) -> (i32, i32) {
    %c0_i32 = arith.constant 0 : i32
    %c0_i32_0 = arith.constant 0 : i32
    %c0_i32_1 = arith.constant 0 : i32
    return %c0_i32, %c0_i32_0 : i32, i32
  }
  func.func @transform_6(%arg0: i32, %arg1: i32) -> (i32, i32) {
    %c0_i32 = arith.constant 0 : i32
    %c0_i32_0 = arith.constant 0 : i32
    %c0_i32_1 = arith.constant 0 : i32
    return %c0_i32, %c0_i32_0 : i32, i32
  }
  func.func @transform_7(%arg0: i32, %arg1: i32) -> (i32, i32) {
    %c0_i32 = arith.constant 0 : i32
    %c0_i32_0 = arith.constant 0 : i32
    %c0_i32_1 = arith.constant 0 : i32
    return %c0_i32, %c0_i32_0 : i32, i32
  }
  func.func @transform_8(%arg0: i32, %arg1: i32) -> (i32, i32, i32) {
    %c0_i32 = arith.constant 0 : i32
    %c0_i32_0 = arith.constant 0 : i32
    %c0_i32_1 = arith.constant 0 : i32
    return %arg0, %c0_i32, %c0_i32_0 : i32, i32, i32
  }
}

</mosaic_0001>

<bundles_post_ra>
// kernel: tpu_custom_call.1
= control target key start
LH: loop header
LB: loop body
LE: loop exit
PB: predicated region body
PF: predicated region fallthrough
CT: control target
= control target key end

     0   :  { %s2255_s0 = inlined_call_operand.hbm [shape: f32[2,8,128], index: 0, kind: input, shape index: {}]   ;;  %s2256_s1 = inlined_call_operand.hbm [shape: f32[2,8,128], index: 1, kind: input, shape index: {}]   ;;  %s2257_s2 = inlined_call_operand.hbm [shape: f32[2,8,128], index: 2, kind: input, shape index: {}]   ;;  %s2258_s3 = inlined_call_operand.hbm [shape: f32[128,128], index: 3, kind: input, shape index: {}]   ;;  %s2259_s4 = inlined_call_operand.hbm [shape: f32[128,128], index: 4, kind: input, shape index: {}]   ;;  %s2260_s5 = inlined_call_operand.hbm [shape: f32[128,128], index: 5, kind: input, shape index: {}]   ;;  %s2261_s6 = inlined_call_operand.hbm [shape: f32[128,128], index: 6, kind: input, shape index: {}]   ;;  %s2262_s7 = inlined_call_operand.hbm [shape: f32[6,128], index: 7, kind: input, shape index: {}]   ;;  %s2263_s8 = inlined_call_operand.hbm [shape: f32[2,8,128], index: 8, kind: output, shape index: {}]  }
   0x1   :  { %2274 = sst [smem:[#allocation32_spill]] %s2256_s1 }
   0x2   :  { %2275 = sst [smem:[#allocation33_spill]] %s2258_s3 }
   0x3   :  { %2276 = sst [smem:[#allocation34_spill]] %s2259_s4 }
   0x4   :  { %2277 = sst [smem:[#allocation35_spill]] %s2260_s5 }
   0x5   :  { %2278 = sst [smem:[#allocation36_spill]] %s2261_s6 }
   0x6   :  { %2279 = sst [smem:[#allocation37_spill]] %s2262_s7 }
   0x7   :  { %13 = vsyncpa [#allocation7], 0 }
   0x8   :  { %15 = vsyncpa [#allocation7 + $0x1], 0 }
   0x9   :  { %16 = vsyncpa [#allocation10], 0 }
   0xa   :  { %18 = vsyncpa [#allocation10 + $0x1], 0 }
   0xb   :  { %19 = vsyncpa [#allocation13], 0 }
   0xc   :  { %20 = vsyncpa [#allocation16], 0 }
   0xd   :  { %21 = vsyncpa [#allocation19], 0 }
   0xe   :  { %22 = vsyncpa [#allocation8], 0 }
   0xf   :  { %24 = vsyncpa [#allocation8 + $0x1], 0  ;;  %s1920_s27 = smov 0   ;;  %s1922_s28 = smov 0  }
  0x10   :  { %s1924_s29 = smov 0   ;;  %s1926_s30 = smov 0  }
  0x11   :  { %s1928_s9 = smov 0   ;;  %s1930_s10 = smov 0  }
  0x12 LB: > { %2280 = sst [smem:[#allocation27_spill]] %s1855_s9  ;;  %s1951_s11 = sadd.s32 4294967295, %s1859_s10   ;;  %s1859_s10 = sphi %s1930_s10, %s30_s10   ;;  %s1855_s9 = sphi %s1928_s9, %s2305_s9   ;;  %s1851_s30 = sphi %s1926_s30, %s2304_s30   ;;  %s1847_s29 = sphi %s1924_s29, %s2308_s29   ;;  %s1843_s28 = sphi %s1922_s28, %s2307_s28   ;;  %s1839_s27 = sphi %s1920_s27, %s2306_s27  }
  0x13   : > { %2281 = sst [smem:[#allocation28_spill]] %s1859_s10  ;;  %p1313_p0 = scmp.ge.s32.totalorder %s1859_s10, 1 }
  0x14   : > { %p63_p1 = scmp.eq.s32.totalorder %s1951_s11, 0  ;;  %p260_p2 = scmp.lt.s32.totalorder %s1859_s10, 3 }
  0x15   : > { %s2282_s3 = sld [smem:[#allocation33_spill]]  ;;  %s1861_s16 = smov [#allocation12]  }
  0x16   : > { %p1959_p3 = pnand %p1313_p0, %p260_p2  ;;  %s273_s17 = sshll.u32 %s1861_s16, 4  ;;  %s274_s17 = int_to_ptr.vmem [resolvable:$true] %s273_s17 }
  0x17   : > { %p1319_p6 = scmp.ge.s32.totalorder %s1859_s10, 2  ;;  %s2285_s5 = sld [smem:[#allocation35_spill]] }
  0x18   : > { %p1380_p4 = pneg %p1959_p3  ;;  %s2264_s22 = smov 128  }
  0x19   : > { %s2266_s23 = smov 8   ;;  %s1864_s24 = smov [#allocation15]  }
  0x1a   : > { %p1967_p5 = pnand %p1380_p4, %p63_p1  ;;  %s301_s25 = sshll.u32 %s1864_s24, 4  ;;  %s302_s25 = int_to_ptr.vmem [resolvable:$true] %s301_s25 }
  0x1b   : > { %s271_s14 = sshll.u32 %s2282_s3, 4  ;;  %s1312_s26 = sadd.s32 4294967294, %s1859_s10   ;;  %s272_s14 = int_to_ptr.hbm [resolvable:$true] %s271_s14 }
  0x1c   : > { %1383 = dma.hbm_to_vmem [thread:$0]  (!%p1967_p5), %s272_s14, 2048, %s274_s17, [#allocation13], %s2264_s22, %s2264_s22, %s2266_s23  }
  0x1d   : > { %s299_s21 = sshll.u32 %s2285_s5, 4  ;;  %s42_s12 = sadd.s32 1, %s1855_s9  ;;  %s300_s21 = int_to_ptr.hbm [resolvable:$true] %s299_s21 }
  0x1e   : > { %1389 = dma.hbm_to_vmem [thread:$0]  (!%p1967_p5), %s300_s21, 2048, %s302_s25, [#allocation16], %s2264_s22, %s2264_s22, %s2266_s23  }
  0x1f   : > { %p44_p7 = scmp.ge.s32.totalorder %s42_s12, 2  ;;  %s49_s13 = sadd.s32 1, %s1847_s29 }
  0x20   : > { %p56_p8 = scmp.ne.s32.totalorder %s1847_s29, %s1843_s28  ;;  %p57_p9 = scmp.eq.s32.totalorder %s1859_s10, 0 }
  0x21   : > { %s2310_s12 = smov (%p44_p7, %s42_s12), 0  ;;  %p62_p11 = scmp.ne.s32.totalorder %s1843_s28, %s1839_s27 }
  0x22   : > { %2286 = sst [smem:[#allocation29_spill]] %s2310_s12  ;;  %p1993_p10 = por %p57_p9, %p56_p8 }
  0x23   : > { %s46_s16 = ssub.s32 %s1855_s9, %s2310_s12  ;;  %p247_p12 = scmp.eq.s32.totalorder %s1951_s11, 1 }
  0x24   : > { %p47_p13 = scmp.eq.s32.totalorder %s46_s16, 0  ;;  %p2004_p0 = por %p63_p1, %p62_p11 }
  0x25   : > { %p2008_p2 = por %p247_p12, %p56_p8  ;;  %p253_p4 = scmp.eq.s32.totalorder %s1312_s26, 1 }
  0x26   : > { %s2013_s20 = scalar_select %p47_p13, %s1847_s29, %s49_s13  }
  0x27   : > { %p2015_p7 = por %p253_p4, %p62_p11  ;;  %p1415_p9 = scmp.lt.s32.totalorder %s1859_s10, 2 }
  0x28   : > { %2290 = sst [smem:[#allocation30_spill]] %s2013_s20  ;;  %s2270_s24 = sand.u32 1, %s1847_s29  }
  0x29   : > { %s2291_s21 = scalar_select %p2015_p7, 1, 0 }
  0x2a   : > { %s2022_s25 = sshll.u32 %s1855_s9, 3  ;;  %s2026_s16 = sshll.u32 %s2270_s24, 3 }
  0x2b   : > { %2292 = sst [smem:[#allocation31_spill]] %s2291_s21  ;;  %p2030_p8 = pnand %p1415_p9, %p1993_p10 }
  0x2c   : > { %s360_s26 = sand.u32 1, %s1859_s10   ;;  %s2294_s1 = sld [smem:[#allocation32_spill]] }
  0x2d   : > { %s364_s5 = scalar_lea.vmem [#allocation9], %s2026_s16  ;;  %s2295_s4 = sld [smem:[#allocation34_spill]] }
  0x2e   : > { %s373_s12 = sshll.u32 %s364_s5, 4  ;;  %s2043_s21 = scalar_lea.sflag [#allocation10], %s360_s26  ;;  %s374_s12 = int_to_ptr.vmem [resolvable:$true] %s373_s12 }
  0x2f   : > { %s1865_s23 = smov [#allocation14]   ;;  %s2296_s6 = sld [smem:[#allocation36_spill]] }
  0x30   : > { %s287_s13 = sshll.u32 %s1865_s23, 4  ;;  %s2297_s20 = smov 8   ;;  %s288_s13 = int_to_ptr.vmem [resolvable:$true] %s287_s13 }
  0x31   : > { %s2298_s24 = smov 128   ;;  %s2299_s7 = sld [smem:[#allocation37_spill]] }
  0x32   : > { %s369_s3 = scalar_lea.hbm %s2294_s1, %s2022_s25  ;;  %s1867_s1 = smov [#allocation18]  }
  0x33   : > { %s371_s9 = sshll.u32 %s369_s3, 4  ;;  %s285_s14 = sshll.u32 %s2295_s4, 4  ;;  %s372_s9 = int_to_ptr.hbm [resolvable:$true] %s371_s9  ;;  %s286_s14 = int_to_ptr.hbm [resolvable:$true] %s285_s14 }
  0x34   : > { %1402 = dma.hbm_to_vmem [thread:$0]  (!%p2030_p8), %s372_s9, 128, %s374_s12, %s2043_s21  }
  0x35   : > { %s313_s3 = sshll.u32 %s2296_s6, 4  ;;  %s1866_s12 = smov [#allocation17]   ;;  %s314_s3 = int_to_ptr.hbm [resolvable:$true] %s313_s3 }
  0x36   : > { %1386 = dma.hbm_to_vmem [thread:$0]  (!%p1967_p5), %s286_s14, 2048, %s288_s13, [#allocation13], %s2298_s24, %s2298_s24, %s2297_s20  }
  0x37   : > { %s328_s9 = sshll.u32 %s2299_s7, 4  ;;  %s315_s23 = sshll.u32 %s1866_s12, 4  ;;  %s329_s9 = int_to_ptr.hbm [resolvable:$true] %s328_s9  ;;  %s316_s23 = int_to_ptr.vmem [resolvable:$true] %s315_s23 }
  0x38   : > { %1392 = dma.hbm_to_vmem [thread:$0]  (!%p1967_p5), %s314_s3, 2048, %s316_s23, [#allocation16], %s2298_s24, %s2298_s24, %s2297_s20  }
  0x39   : > { %s330_s5 = sshll.u32 %s1867_s1, 4  ;;  %s349_s13 = scalar_lea.hbm %s2255_s0, %s2022_s25  ;;  %s331_s5 = int_to_ptr.vmem [resolvable:$true] %s330_s5 }
  0x3a   : > { %1395 = dma.hbm_to_vmem [thread:$0]  (!%p1967_p5), %s329_s9, 128, %s331_s5, [#allocation19]  }
  0x3b   : > { %s345_s26 = scalar_lea.vmem [#allocation6], %s2026_s16  ;;  %s351_s6 = sshll.u32 %s349_s13, 4  ;;  %s352_s6 = int_to_ptr.hbm [resolvable:$true] %s351_s6 }
  0x3c   : > { %s353_s12 = sshll.u32 %s345_s26, 4  ;;  %s2300_s7 = sand.u32 1, %s1847_s29   ;;  %s354_s12 = int_to_ptr.vmem [resolvable:$true] %s353_s12 }
  0x3d   : > { %s342_s10 = scalar_lea.sflag [#allocation7], %s2300_s7  ;;  %s389_s18 = scalar_lea.hbm %s2257_s2, %s2022_s25 }
  0x3e   : > { %1399 = dma.hbm_to_vmem [thread:$0]  (!%p2030_p8), %s352_s6, 128, %s354_s12, %s342_s10  }
  0x3f   : > { %s384_s24 = scalar_lea.vmem [#allocation11], %s2026_s16  ;;  %s391_s9 = sshll.u32 %s389_s18, 4  ;;  %s392_s9 = int_to_ptr.hbm [resolvable:$true] %s391_s9 }
  0x40   : > { %s393_s23 = sshll.u32 %s384_s24, 4  ;;  %402 = sbr.rel (%p1959_p3) target bundleno = 1496 (0x5d8), region = 52  ;;  %s394_s23 = int_to_ptr.vmem [resolvable:$true] %s393_s23 }
  0x41   : > { %1405 = dma.hbm_to_vmem [thread:$0]  (!%p2030_p8), %s392_s9, 128, %s394_s23, %s2043_s21  }
  0x42   : > { %s2086_s1 = sand.u32 (!%p1959_p3), 1, %s1843_s28  }
  0x43   : > { %s2089_s6 = sshll.u32 (!%p1959_p3), %s2086_s1, 3  ;;  %s405_s7 = scalar_lea.sflag (!%p1959_p3), [#allocation7], %s2086_s1 }
  0x44   : > { %s408_s10 = scalar_lea.vmem (!%p1959_p3), [#allocation6], %s2089_s6 }
  0x45   : > { %1814 = dma.done.wait (%p2004_p0), %s405_s7, 128  }
  0x46   : > { %1816 = vsyncadd (%p2004_p0), %s405_s7, 4294967168  ;;  %s414_s15 = sand.u32 1, %s1951_s11   ;;  %s418_s21 = scalar_lea.vmem [#allocation9], %s2089_s6 }
  0x47   : > { %s415_s22 = scalar_lea.sflag [#allocation10], %s414_s15 }
  0x48   : > { %1818 = dma.done.wait (%p2004_p0), %s415_s22, 256  }
  0x49   : > { %1820 = vsyncadd (%p2004_p0), %s415_s22, 4294967040  ;;  %s428_s25 = scalar_lea.vmem [#allocation11], %s2089_s6 }
  0x4a   : > { %1822 = dma.done.wait (%p63_p1), [#allocation13], 4096  }
  0x4b   : > { %1824 = vsyncadd (%p63_p1), [#allocation13], 4294963200 }
  0x4c   : > { %1826 = dma.done.wait (%p63_p1), [#allocation16], 4096  }
  0x4d   : > { %1828 = vsyncadd (%p63_p1), [#allocation16], 4294963200 }
  0x4e   : > { %1830 = dma.done.wait (%p63_p1), [#allocation19], 128  }
  0x4f   : > { %1832 = vsyncadd (%p63_p1), [#allocation19], 4294967168  ;;  %v517_v0 = vld [vmem:[#allocation12 + $0x78] sm:$0xff]  ;;  %v516_v2 = vld [vmem:[#allocation12 + $0x70] sm:$0xff]  ;;  %vm550_vm0 = vcmask 261120   ;;  %s1868_s11 = smov 64  }
  0x50   : > { %v585_v1 = vld [vmem:[#allocation14 + $0x78] sm:$0xff]  ;;  %520 = vmatpush.msra.mxu0 %v517_v0  ;;  %v584_v3 = vld [vmem:[#allocation14 + $0x70] sm:$0xff]  ;;  %v515_v4 = vld [vmem:[#allocation12 + $0x68] sm:$0xff]  ;;  %s1869_s17 = smov 32   ;;  %s1870_s16 = smov 96   ;;  %vm555_vm1 = vcmask 7168  }
  0x51   : > { %588 = vmatpush.msra.mxu1 %v585_v1  ;;  %v583_v5 = vld [vmem:[#allocation14 + $0x68] sm:$0xff]  ;;  %v514_v6 = vld [vmem:[#allocation12 + $0x60] sm:$0xff]  ;;  %v513_v8 = vld [vmem:[#allocation12 + $0x58] sm:$0xff]  ;;  %vm772_vm2 = vcmask 64512   ;;  %vm1046_vm3 = vcmask 523264   ;;  %vm1048_vm4 = vcmask 785408  }
  0x52   : > { %521 = vmatpush.msra.mxu0 %v516_v2  ;;  %v582_v7 = vld [vmem:[#allocation14 + $0x60] sm:$0xff]  ;;  %v581_v9 = vld [vmem:[#allocation14 + $0x58] sm:$0xff]  ;;  %v512_v10 = vld [vmem:[#allocation12 + $0x50] sm:$0xff]  ;;  %s1349_s5 = sshll.u32 %s1851_s30, 3  ;;  %s496_s26 = scalar_lea.vmem [#allocation20], %s2089_s6 }
  0x53   : > { %589 = vmatpush.msra.mxu1 %v584_v3  ;;  %v580_v11 = vld [vmem:[#allocation14 + $0x50] sm:$0xff]  ;;  %v511_v12 = vld [vmem:[#allocation12 + $0x48] sm:$0xff]  ;;  %v510_v14 = vld [vmem:[#allocation12 + $0x40] sm:$0xff]  ;;  %s1135_s13 = scalar_lea.hbm %s2263_s8, %s1349_s5  ;;  %s1137_s12 = sshll.u32 %s496_s26, 4  ;;  %s1138_s12 = int_to_ptr.vmem [resolvable:$true] %s1137_s12 }
  0x54   : > { %522 = vmatpush.msra.mxu0 %v515_v4  ;;  %v579_v13 = vld [vmem:[#allocation14 + $0x48] sm:$0xff]  ;;  %v578_v15 = vld [vmem:[#allocation14 + $0x40] sm:$0xff]  ;;  %v509_v16 = vld [vmem:[#allocation12 + $0x38] sm:$0xff]  ;;  %s1139_s3 = sshll.u32 %s1135_s13, 4  ;;  %s1125_s30 = scalar_lea.sflag [#allocation8], %s2086_s1  ;;  %s1140_s3 = int_to_ptr.hbm [resolvable:$true] %s1139_s3 }
  0x55   : > { %590 = vmatpush.msra.mxu1 %v583_v5  ;;  %v577_v17 = vld [vmem:[#allocation14 + $0x38] sm:$0xff]  ;;  %v508_v18 = vld [vmem:[#allocation12 + $0x30] sm:$0xff]  ;;  %v507_v20 = vld [vmem:[#allocation12 + $0x28] sm:$0xff]  ;;  %s1775_s20 = sshra.s32 %s1140_s3, 4  ;;  %s1781_s9 = scalar_lea.hbm %s2263_s8, 16  ;;  %s1776_s20 = int_to_ptr.hbm [resolvable:$true] %s1775_s20 }
  0x56   : > { %523 = vmatpush.msra.mxu0 %v514_v6  ;;  %v576_v19 = vld [vmem:[#allocation14 + $0x30] sm:$0xff]  ;;  %v575_v21 = vld [vmem:[#allocation14 + $0x28] sm:$0xff]  ;;  %v506_v22 = vld [vmem:[#allocation12 + $0x20] sm:$0xff]  ;;  %v1871_v6 = vmov -inf   ;;  %s1777_s18 = scalar_lea.hbm %s1776_s20, 8  ;;  %p1782_p10 = scmp.lt.s32.totalorder %s1776_s20, %s2263_s8 }
  0x57   : > { %591 = vmatpush.msra.mxu1 %v582_v7  ;;  %v574_v23 = vld [vmem:[#allocation14 + $0x20] sm:$0xff]  ;;  %v505_v24 = vld [vmem:[#allocation12 + $0x18] sm:$0xff]  ;;  %v504_v26 = vld [vmem:[#allocation12 + $0x10] sm:$0xff]  ;;  %559 = vst.msk [vmem:[#allocation3 + $0x18] sm:$0xff] %vm555_vm1, %v1871_v6  ;;  %p1778_p1 = scmp.ne.s32.totalorder %s1776_s20, %s1777_s18  ;;  %p1783_p11 = scmp.lt.s32.totalorder %s1781_s9, %s1777_s18 }
  0x58   : > { %524 = vmatpush.msra.mxu0 %v513_v8  ;;  %v573_v25 = vld [vmem:[#allocation14 + $0x18] sm:$0xff]  ;;  %v572_v27 = vld [vmem:[#allocation14 + $0x10] sm:$0xff]  ;;  %v503_v28 = vld [vmem:[#allocation12 + $0x8] sm:$0xff]  ;;  %556 = vst.msk [vmem:[#allocation3] sm:$0xff] %vm555_vm1, %v1871_v6 }
  0x59   : > { %592 = vmatpush.msra.mxu1 %v581_v9  ;;  %v571_v29 = vld [vmem:[#allocation14 + $0x8] sm:$0xff]  ;;  %v502_v30 = vld [vmem:[#allocation12] sm:$0xff]  ;;  %v2118_v32 = vld [vmem:[%s408_s10] sm:$0xff]  ;;  %557 = vst.msk [vmem:[#allocation3 + $0x8] sm:$0xff] %vm555_vm1, %v1871_v6  ;;  %p1779_p3 = pnand %p1778_p1, %p2008_p2  ;;  %p1784_p12 = por %p1783_p11, %p1782_p10 }
  0x5a   : > { %525 = vmatpush.msra.mxu0 %v512_v10  ;;  %v570_v31 = vld [vmem:[#allocation14] sm:$0xff]  ;;  %v623_v34 = vld [vmem:[#allocation15 + $0x78] sm:$0xff]  ;;  %v622_v35 = vld [vmem:[#allocation15 + $0x70] sm:$0xff]  ;;  %558 = vst.msk [vmem:[#allocation3 + $0x10] sm:$0xff] %vm555_vm1, %v1871_v6 }
  0x5b   : > { %593 = vmatpush.msra.mxu1 %v580_v11  ;;  %v568_v33 = vld [vmem:[%s418_s21] sm:$0xff]  ;;  %626 = vmatpush.msra.mxu2 %v623_v34  ;;  %v619_v38 = vld [vmem:[#allocation15 + $0x58] sm:$0xff]  ;;  %v618_v39 = vld [vmem:[#allocation15 + $0x50] sm:$0xff]  ;;  %p1780_p5 = pneg %p1779_p3 }
  0x5c   : > { %526 = vmatpush.msra.mxu0 %v511_v12  ;;  %v621_v36 = vld [vmem:[#allocation15 + $0x68] sm:$0xff]  ;;  %v620_v37 = vld [vmem:[#allocation15 + $0x60] sm:$0xff]  ;;  %v615_v42 = vld [vmem:[#allocation15 + $0x38] sm:$0xff] }
  0x5d   : > { %594 = vmatpush.msra.mxu1 %v579_v13  ;;  %627 = vmatpush.msra.mxu2 %v622_v35  ;;  %v617_v40 = vld [vmem:[#allocation15 + $0x48] sm:$0xff]  ;;  %v616_v41 = vld [vmem:[#allocation15 + $0x40] sm:$0xff]  ;;  %v614_v43 = vld [vmem:[#allocation15 + $0x30] sm:$0xff]  ;;  %p1785_p13 = pnand %p1784_p12, %p1780_p5 }
  0x5e   : > { %527 = vmatpush.msra.mxu0 %v510_v14  ;;  %v1487_v44 = vld [vmem:[#allocation18] ss:$0 sm:$0xff]  ;;  %v1488_v45 = vld [vmem:[#allocation18 + $0x1] ss:$0 sm:$0xff]  ;;  %v613_v46 = vld [vmem:[#allocation15 + $0x28] sm:$0xff] }
  0x5f   : > { %595 = vmatpush.msra.mxu1 %v578_v15  ;;  %628 = vmatpush.msra.mxu2 %v621_v36  ;;  %v612_v51 = vld [vmem:[#allocation15 + $0x20] sm:$0xff]  ;;  %v611_v52 = vld [vmem:[#allocation15 + $0x18] sm:$0xff]  ;;  %v610_v54 = vld [vmem:[#allocation15 + $0x10] sm:$0xff]  ;;  %v1872_v15 = vmov 0  }
  0x60   : > { %528 = vmatpush.msra.mxu0 %v509_v16  ;;  %v609_v55 = vld [vmem:[#allocation15 + $0x8] sm:$0xff]  ;;  %v608_v56 = vld [vmem:[#allocation15] sm:$0xff]  ;;  %v569_v58 = vld [vmem:[%s428_s25] sm:$0xff]  ;;  %1484 = vset.pattern.permute.xlu0 %v1872_v15  ;;  %v1873_v16 = vmov 0.0  }
  0x61   : > { %596 = vmatpush.msra.mxu1 %v577_v17  ;;  %629 = vmatpush.msra.mxu2 %v620_v37  ;;  %v1489_v3 = vld [vmem:[#allocation18 + $0x2] ss:$0 sm:$0xff]  ;;  %562 = vst.msk [vmem:[#allocation4 + $0x10] sm:$0xff] %vm555_vm1, %v1873_v16  ;;  %v2165_v17 = vld [vmem:[#allocation3 + $0x18] sm:$0xff] }
  0x62   : > { %529 = vmatpush.msra.mxu0 %v508_v18  ;;  %1485 = vset.pattern.permute.xlu1 %v1872_v15  ;;  %560 = vst.msk [vmem:[#allocation4] sm:$0xff] %vm555_vm1, %v1873_v16  ;;  %v769_v18 = vld [vmem:[#allocation3 + $0x8] sm:$0xff] }
  0x63   : > { %597 = vmatpush.msra.mxu1 %v576_v19  ;;  %630 = vmatpush.msra.mxu2 %v619_v38  ;;  %561 = vst.msk [vmem:[#allocation4 + $0x8] sm:$0xff] %vm555_vm1, %v1873_v16 }
  0x64   : > { %530 = vmatpush.msra.mxu0 %v507_v20  ;;  %1486 = vset.pattern.permute.xlu2 %v1872_v15  ;;  %563 = vst.msk [vmem:[#allocation4 + $0x18] sm:$0xff] %vm555_vm1, %v1873_v16 }
  0x65   : > { %598 = vmatpush.msra.mxu1 %v575_v21  ;;  %631 = vmatpush.msra.mxu2 %v618_v39  ;;  %564 = vst.msk [vmem:[#allocation5] sm:$0xff] %vm550_vm0, %v1873_v16 }
  0x66   : > { %531 = vmatpush.msra.mxu0 %v506_v22  ;;  %565 = vst.msk [vmem:[#allocation5 + $0x8] sm:$0xff] %vm550_vm0, %v1873_v16 }
  0x67   : > { %599 = vmatpush.msra.mxu1 %v574_v23  ;;  %632 = vmatpush.msra.mxu2 %v617_v40  ;;  %566 = vst.msk [vmem:[#allocation5 + $0x10] sm:$0xff] %vm550_vm0, %v1873_v16 }
  0x68   : > { %532 = vmatpush.msra.mxu0 %v505_v24  ;;  %567 = vst.msk [vmem:[#allocation5 + $0x18] sm:$0xff] %vm550_vm0, %v1873_v16 }
  0x69   : > { %600 = vmatpush.msra.mxu1 %v573_v25  ;;  %633 = vmatpush.msra.mxu2 %v616_v41  ;;  %v770_v25 = vld [vmem:[#allocation3 + $0x10] sm:$0xff]  ;;  %v833_v16 = vld [vmem:[#allocation4] sm:$0xff] }
  0x6a   : > { %533 = vmatpush.msra.mxu0 %v504_v26  ;;  %v834_v6 = vld [vmem:[#allocation4 + $0x8] sm:$0xff] }
  0x6b   : > { %601 = vmatpush.msra.mxu1 %v572_v27  ;;  %634 = vmatpush.msra.mxu2 %v615_v42 }
  0x6c   : > { %534 = vmatpush.msra.mxu0 %v503_v28 }
  0x6d   : > { %602 = vmatpush.msra.mxu1 %v571_v29  ;;  %635 = vmatpush.msra.mxu2 %v614_v43  ;;  %v2178_v29 = vld [vmem:[#allocation3] sm:$0xff]  ;;  %v955_v15 = vld [vmem:[#allocation5 + $0x8] sm:$0xff] }
  0x6e   : > { %535 = vmatpush.msra.mxu0 %v502_v30 }
  0x6f   : > { %603 = vmatpush.msra.mxu1 %v570_v31  ;;  %536 = vmatmul.f32.vlgmr.msra.gmra.mxu0 %v2118_v32 }
  0x70   : > { %604 = vmatmul.f32.vlgmr.msra.gmra.mxu1 %v568_v33  ;;  %636 = vmatpush.msra.mxu2 %v613_v46 }
  0x72   : > { %637 = vmatpush.msra.mxu2 %v612_v51 }
  0x74   : > { %638 = vmatpush.msra.mxu2 %v611_v52 }
  0x76   : > { %639 = vmatpush.msra.mxu2 %v610_v54 }
  0x78   : > { %640 = vmatpush.msra.mxu2 %v609_v55 }
  0x7a   : > { %641 = vmatpush.msra.mxu2 %v608_v56 }
  0x7b   : > { %642 = vmatmul.f32.vlgmr.msra.gmra.mxu2 %v569_v58 }
  0xec   : > { %v537_v47 = vpop.f32.mrf.mxu0 }
  0xed   : > { %v605_v48 = vpop.f32.mrf.mxu1  ;;  %v538_v49 = vadd.f32 %v1487_v44, %v537_v47 }
  0xee   : > { %v606_v50 = vadd.f32 %v1488_v45, %v605_v48 }
  0xef   : > { %551 = vst.msk [vmem:[#allocation2] sm:$0xff] %vm550_vm0, %v538_v49  ;;  %547 = vrot.lane.b32.xlu0 %v538_v49, %s1869_s17 }
  0xf0   : > { %649 = vrot.lane.b32.xlu2 %v606_v50, %s1868_s11  ;;  %651 = vrot.lane.b32.xlu1 %v606_v50, %s1869_s17 }
  0xf1   : > { %1336 = vmatpush.xpose.msk.msrb.mxu0 %vm550_vm0, %v606_v50 }
  0xf6   : > { %v663_v53 = vld [vmem:[#allocation2] sm:$0xff] }
  0xf7   : > { %544 = vrot.lane.b32.xlu0 %v538_v49, %s1868_s11  ;;  %1337 = vmatmul.msk.f32.vlgmr.msrb.gmra.mxu0 %vm550_vm0, %v663_v53 }
  0xf8   : > { %647 = vrot.lane.b32.xlu2 %v606_v50, %s1870_s16  ;;  %541 = vrot.lane.b32.xlu1 %v538_v49, %s1870_s16 }
  0xfe   : > { %v643_v4 = vpop.f32.mrf.mxu2 }
  0xff   : > { %v644_v5 = vadd.f32 %v1489_v3, %v643_v4 }
 0x14a   : > { %v650_v57 = vpop.permute.xlu2 %649 }
 0x14b   : > { %1340 = vmatpush.xpose.msk.msrb.mxu2 %vm550_vm0, %v650_v57 }
 0x152   : > { %v648_v59 = vpop.permute.xlu2 %647 }
 0x153   : > { %1338 = vmatpush.xpose.msk.msrb.mxu1 %vm550_vm0, %v648_v59 }
 0x161   : > { %v548_v61 = vpop.permute.xlu0 %547 }
 0x162   : > { %v652_v60 = vpop.permute.xlu1 %651  ;;  %554 = vst.msk [vmem:[#allocation2 + $0x18] sm:$0xff] %vm550_vm0, %v548_v61 }
 0x163   : > { %1342 = vmatpush.xpose.msk.msra.mxu3 %vm550_vm0, %v652_v60 }
 0x167   : > { %880 = vmatpush.msrb.mxu3 %v644_v5 }
 0x169   : > { %v545_v63 = vpop.permute.xlu0 %544  ;;  %v666_v0 = vld [vmem:[#allocation2 + $0x18] sm:$0xff] }
 0x16a   : > { %v542_v62 = vpop.permute.xlu1 %541  ;;  %553 = vst.msk [vmem:[#allocation2 + $0x10] sm:$0xff] %vm550_vm0, %v545_v63  ;;  %1343 = vmatmul.msk.f32.vlgmr.msra.gmra.mxu3 %vm550_vm0, %v666_v0  ;;  %v835_v63 = vld [vmem:[#allocation4 + $0x10] sm:$0xff] }
 0x16b   : > { %552 = vst.msk [vmem:[#allocation2 + $0x8] sm:$0xff] %vm550_vm0, %v542_v62 }
 0x171   : > { %v665_v2 = vld [vmem:[#allocation2 + $0x10] sm:$0xff] }
 0x172   : > { %v664_v1 = vld [vmem:[#allocation2 + $0x8] sm:$0xff]  ;;  %1341 = vmatmul.msk.f32.vlgmr.msrb.gmra.mxu2 %vm550_vm0, %v665_v2 }
 0x173   : > { %1339 = vmatmul.msk.f32.vlgmr.msrb.gmra.mxu1 %vm550_vm0, %v664_v1 }
 0x174   : > { %v690_v13 = vpop.f32.mrf.mxu0 }
 0x175   : > { %v773_v14 = vsel %vm772_vm2, %v690_v13, -inf }
 0x1ed   : > { %v2147_v7 = vpop.f32.mrf.mxu3 }
 0x1ee   : > { %v782_v9 = vsel %vm772_vm2, %v2147_v7, -inf }
 0x1ef   : > { %783 = vmax.xlane.f32.xlu0 %v782_v9 }
 0x1f0   : > { %v2149_v8 = vpop.f32.mrf.mxu1 }
 0x1f1   : > { %v776_v10 = vsel %vm772_vm2, %v2149_v8, -inf }
 0x1f2   : > { %777 = vmax.xlane.f32.xlu1 %v776_v10 }
 0x1f5   : > { %v740_v11 = vpop.f32.mrf.mxu2 }
 0x1f6   : > { %v779_v12 = vsel %vm772_vm2, %v740_v11, -inf }
 0x1f7   : > { %780 = vmax.xlane.f32.xlu2 %v779_v12 }
 0x1ff   : > { %774 = vmax.xlane.f32.xlu2 %v773_v14 }
 0x262   : > { %v784_v19 = vpop.xlane.xlu0 %783 }
 0x263   : > { %v2168_v20 = vmax.f32 %v2165_v17, %v784_v19 }
 0x265   : > { %v778_v21 = vpop.xlane.xlu1 %777  ;;  %v792_v23 = vsub.f32 %v2165_v17, %v2168_v20  ;;  %993 = vst.msk [vmem:[#allocation3 + $0x18] sm:$0xff] %vm555_vm1, %v2168_v20  ;;  %818 = vperm.xlu0 %1484, %v2168_v20  }
 0x266   : > { %v786_v22 = vmax.f32 %v769_v18, %v778_v21 }
 0x267   : > { %v799_v60 = vmul.f32 1.442695, %v792_v23 }
 0x268   : > { %v790_v24 = vsub.f32 %v769_v18, %v786_v22  ;;  %991 = vst.msk [vmem:[#allocation3 + $0x8] sm:$0xff] %vm555_vm1, %v786_v22  ;;  %808 = vperm.xlu1 %1485, %v786_v22  }
 0x26a   : > { %v781_v26 = vpop.xlane.xlu2 %780  ;;  %v795_v51 = vmul.f32 1.442695, %v790_v24  ;;  %v956_v24 = vld [vmem:[#allocation5 + $0x10] sm:$0xff] }
 0x26b   : > { %v787_v27 = vmax.f32 %v770_v25, %v781_v26 }
 0x26d   : > { %v791_v28 = vsub.f32 %v770_v25, %v787_v27  ;;  %992 = vst.msk [vmem:[#allocation3 + $0x10] sm:$0xff] %vm555_vm1, %v787_v27  ;;  %813 = vperm.xlu2 %1486, %v787_v27  }
 0x26f   : > { %v797_v59 = vmul.f32 1.442695, %v791_v28 }
 0x270   : > { %660 = vrot.lane.b32.xlu1 %v644_v5, %s1869_s17 }
 0x272   : > { %v775_v30 = vpop.xlane.xlu2 %774 }
 0x273   : > { %v2181_v31 = vmax.f32 %v2178_v29, %v775_v30 }
 0x275   : > { %v789_v33 = vsub.f32 %v2178_v29, %v2181_v31  ;;  %990 = vst.msk [vmem:[#allocation3] sm:$0xff] %vm555_vm1, %v2181_v31  ;;  %654 = vrot.lane.b32.xlu2 %v644_v5, %s1870_s16 }
 0x277   : > { %v793_v4 = vmul.f32 1.442695, %v789_v33 }
 0x278   : > { %657 = vrot.lane.b32.xlu1 %v644_v5, %s1868_s11  ;;  %v836_v5 = vld [vmem:[#allocation4 + $0x18] sm:$0xff] }
 0x27d   : > { %803 = vperm.xlu2 %1486, %v2181_v31  }
 0x2c7   : > { %v814_v34 = vpop.permute.xlu2 %813 }
 0x2c8   : > { %v823_v35 = vsub.f32 %v740_v11, %v814_v34 }
 0x2ca   : > { %v829_v36 = vmul.f32 1.442695, %v823_v35 }
 0x2cc   : > { %1493 = vpow2.f32 %v829_v36  ;;  %v957_v36 = vld [vmem:[#allocation5 + $0x18] sm:$0xff] }
 0x2cf   : > { %v655_v37 = vpop.permute.xlu2 %654 }
 0x2d0   : > { %903 = vmatpush.msra.mxu0 %v655_v37 }
 0x2d2   : > { %v1494_v38 = vpop.eup %1493 }
 0x2d3   : > { %v847_v39 = vsel %vm772_vm2, %v1494_v38, 0.0 }
 0x2d4   : > { %848 = vadd.xlane.f32.xlu1 %v847_v39 }
 0x2d7   : > { %v819_v40 = vpop.permute.xlu0 %818  ;;  %v804_v41 = vpop.permute.xlu2 %803 }
 0x2d8   : > { %v824_v42 = vsub.f32 %v2147_v7, %v819_v40  ;;  %v821_v43 = vsub.f32 %v690_v13, %v804_v41 }
 0x2da   : > { %v809_v44 = vpop.permute.xlu1 %808  ;;  %v831_v46 = vmul.f32 1.442695, %v824_v42  ;;  %v825_v47 = vmul.f32 1.442695, %v821_v43 }
 0x2db   : > { %v822_v45 = vsub.f32 %v2149_v8, %v809_v44 }
 0x2dc   : > { %1495 = vpow2.f32 %v831_v46 }
 0x2dd   : > { %v827_v48 = vmul.f32 1.442695, %v822_v45  ;;  %1497 = vpow2.f32 %v825_v47  ;;  %v1065_v47 = vld [vmem:[#allocation17 + $0x78] sm:$0xff] }
 0x2de   : > { %1068 = vmatpush.msra.mxu3 %v1065_v47 }
 0x2df   : > { %1499 = vpow2.f32 %v827_v48  ;;  %v1064_v48 = vld [vmem:[#allocation17 + $0x70] sm:$0xff] }
 0x2e0   : > { %1501 = vpow2.f32 %v795_v51  ;;  %1069 = vmatpush.msra.mxu3 %v1064_v48  ;;  %v1061_v51 = vld [vmem:[#allocation17 + $0x58] sm:$0xff] }
 0x2e1   : > { %1503 = vpow2.f32 %v797_v59  ;;  %v1056_v59 = vld [vmem:[#allocation17 + $0x30] sm:$0xff] }
 0x2e2   : > { %v661_v49 = vpop.permute.xlu1 %660  ;;  %v1496_v50 = vpop.eup %1495  ;;  %1505 = vpow2.f32 %v799_v60  ;;  %v954_v60 = vld [vmem:[#allocation5] sm:$0xff] }
 0x2e3   : > { %949 = vmatpush.msra.mxu2 %v661_v49  ;;  %v1498_v52 = vpop.eup %1497  ;;  %v850_v53 = vsel %vm772_vm2, %v1496_v50, 0.0  ;;  %v1063_v49 = vld [vmem:[#allocation17 + $0x68] sm:$0xff] }
 0x2e4   : > { %1347 = vmatmul.msk.f32.vlgmr.msra.gmra.mxu2 %vm772_vm2, %v1496_v50  ;;  %1344 = vmatmul.msk.f32.vlgmr.msrb.gmra.mxu3 %vm772_vm2, %v1498_v52  ;;  %v841_v58 = vsel %vm772_vm2, %v1498_v52, 0.0  ;;  %v1062_v50 = vld [vmem:[#allocation17 + $0x60] sm:$0xff]  ;;  %v1060_v52 = vld [vmem:[#allocation17 + $0x50] sm:$0xff] }
 0x2e5   : > { %v1500_v54 = vpop.eup %1499  ;;  %851 = vadd.xlane.f32.xlu2 %v850_v53  ;;  %1070 = vmatpush.msra.mxu3 %v1063_v49  ;;  %v1059_v53 = vld [vmem:[#allocation17 + $0x48] sm:$0xff] }
 0x2e6   : > { %1345 = vmatmul.msk.f32.vlgmr.msra.gmra.mxu0 %vm772_vm2, %v1500_v54  ;;  %v844_v55 = vsel %vm772_vm2, %v1500_v54, 0.0  ;;  %v1502_v57 = vpop.eup %1501 }
 0x2e7   : > { %845 = vadd.xlane.f32.xlu0 %v844_v55  ;;  %v1504_v61 = vpop.eup %1503  ;;  %v838_v11 = vmul.f32 %v1502_v57, %v834_v6  ;;  %1071 = vmatpush.msra.mxu3 %v1062_v50  ;;  %v1050_v6 = vld [vmem:[#allocation17] sm:$0xff] }
 0x2e8   : > { %v1506_v62 = vpop.eup %1505  ;;  %v839_v0 = vmul.f32 %v1504_v61, %v835_v63 }
 0x2e9   : > { %v840_v7 = vmul.f32 %v1506_v62, %v836_v5  ;;  %1072 = vmatpush.msra.mxu3 %v1061_v51  ;;  %v1051_v5 = vld [vmem:[#allocation17 + $0x8] sm:$0xff] }
 0x2ea   : > { %v658_v56 = vpop.permute.xlu1 %657 }
 0x2eb   : > { %926 = vmatpush.msra.mxu1 %v658_v56  ;;  %1073 = vmatpush.msra.mxu3 %v1060_v52 }
 0x2ec   : > { %1346 = vmatmul.msk.f32.vlgmr.msra.gmra.mxu1 %vm772_vm2, %v1494_v38 }
 0x2ed   : > { %965 = vperm.xlu1 %1485, %v1502_v57   ;;  %v1058_v57 = vld [vmem:[#allocation17 + $0x40] sm:$0xff]  ;;  %1074 = vmatpush.msra.mxu3 %v1059_v53 }
 0x2ef   : > { %842 = vadd.xlane.f32.xlu0 %v841_v58  ;;  %v1057_v58 = vld [vmem:[#allocation17 + $0x38] sm:$0xff]  ;;  %1075 = vmatpush.msra.mxu3 %v1058_v57 }
 0x2f1   : > { %1076 = vmatpush.msra.mxu3 %v1057_v58 }
 0x2f3   : > { %1077 = vmatpush.msra.mxu3 %v1056_v59 }
 0x2fd   : > { %970 = vperm.xlu2 %1486, %v1504_v61   ;;  %v1055_v61 = vld [vmem:[#allocation17 + $0x28] sm:$0xff] }
 0x2fe   : > { %1078 = vmatpush.msra.mxu3 %v1055_v61 }
 0x303   : > { %975 = vperm.xlu0 %1484, %v1506_v62  }
 0x347   : > { %v849_v1 = vpop.xlane.xlu1 %848 }
 0x348   : > { %v855_v2 = vadd.f32 %v849_v1, %v839_v0 }
 0x34a   : > { %860 = vst.msk [vmem:[#allocation4 + $0x10] sm:$0xff] %vm555_vm1, %v855_v2  ;;  %v1054_v2 = vld [vmem:[#allocation17 + $0x20] sm:$0xff] }
 0x34b   : > { %1079 = vmatpush.msra.mxu3 %v1054_v2 }
 0x351   : > { %v1003_v3 = vld [vmem:[#allocation4 + $0x10] sm:$0xff] }
 0x352   : > { %1507 = vrcp.f32 %v1003_v3  ;;  %v1053_v3 = vld [vmem:[#allocation17 + $0x18] sm:$0xff] }
 0x353   : > { %1509 = vpow2.f32 %v793_v4  ;;  %v1052_v4 = vld [vmem:[#allocation17 + $0x10] sm:$0xff]  ;;  %1080 = vmatpush.msra.mxu3 %v1053_v3 }
 0x355   : > { %1081 = vmatpush.msra.mxu3 %v1052_v4 }
 0x357   : > { %1082 = vmatpush.msra.mxu3 %v1051_v5 }
 0x358   : > { %v852_v8 = vpop.xlane.xlu2 %851  ;;  %v1508_v9 = vpop.eup %1507 }
 0x359   : > { %v856_v10 = vadd.f32 %v852_v8, %v840_v7  ;;  %1021 = vperm.xlu0 %1484, %v1508_v9   ;;  %v1510_v14 = vpop.eup %1509  ;;  %1083 = vmatpush.msra.mxu3 %v1050_v6 }
 0x35a   : > { %v846_v12 = vpop.xlane.xlu0 %845  ;;  %v837_v19 = vmul.f32 %v1510_v14, %v833_v16  ;;  %v1490_v16 = vld [vmem:[#allocation18 + $0x3] ss:$0 sm:$0xff] }
 0x35b   : > { %861 = vst.msk [vmem:[#allocation4 + $0x18] sm:$0xff] %vm555_vm1, %v856_v10  ;;  %v854_v13 = vadd.f32 %v846_v12, %v838_v11 }
 0x35d   : > { %859 = vst.msk [vmem:[#allocation4 + $0x8] sm:$0xff] %vm555_vm1, %v854_v13 }
 0x35f   : > { %v966_v17 = vpop.permute.xlu1 %965 }
 0x360   : > { %v979_v18 = vmul.f32 %v966_v17, %v955_v15  ;;  %v971_v25 = vpop.permute.xlu2 %970 }
 0x361   : > { %v980_v28 = vmul.f32 %v971_v25, %v956_v24 }
 0x362   : > { %v843_v20 = vpop.xlane.xlu0 %842  ;;  %v1004_v21 = vld [vmem:[#allocation4 + $0x18] sm:$0xff] }
 0x363   : > { %v853_v22 = vadd.f32 %v843_v20, %v837_v19  ;;  %v905_v23 = vpop.f32.mrf.mxu0  ;;  %1511 = vrcp.f32 %v1004_v21  ;;  %v1874_v20 = vmov 128.0  }
 0x364   : > { %v983_v26 = vadd.f32 %v979_v18, %v905_v23  ;;  %v1002_v27 = vld [vmem:[#allocation4 + $0x8] sm:$0xff] }
 0x365   : > { %858 = vst.msk [vmem:[#allocation4] sm:$0xff] %vm555_vm1, %v853_v22  ;;  %1513 = vrcp.f32 %v1002_v27 }
 0x366   : > { %987 = vst.msk [vmem:[#allocation5 + $0x8] sm:$0xff] %vm550_vm0, %v983_v26 }
 0x367   : > { %v951_v39 = vpop.f32.mrf.mxu2  ;;  %v882_v0 = vpop.f32.mrf.mxu3 }
 0x369   : > { %v928_v29 = vpop.f32.mrf.mxu1  ;;  %v1512_v30 = vpop.eup %1511 }
 0x36a   : > { %v984_v31 = vadd.f32 %v980_v28, %v928_v29  ;;  %1026 = vperm.xlu2 %1486, %v1512_v30  }
 0x36b   : > { %v1514_v33 = vpop.eup %1513 }
 0x36c   : > { %988 = vst.msk [vmem:[#allocation5 + $0x10] sm:$0xff] %vm550_vm0, %v984_v31  ;;  %1016 = vperm.xlu1 %1485, %v1514_v33   ;;  %v1001_v34 = vld [vmem:[#allocation4] sm:$0xff] }
 0x36d   : > { %1515 = vrcp.f32 %v1001_v34  ;;  %v998_v55 = vld [vmem:[#allocation5 + $0x8] sm:$0xff] }
 0x36e   : > { %1517 = vrcp.f32 %v1874_v20 }
 0x373   : > { %v1516_v35 = vpop.eup %1515  ;;  %v999_v45 = vld [vmem:[#allocation5 + $0x10] sm:$0xff] }
 0x374   : > { %960 = vperm.xlu1 %1485, %v1510_v14   ;;  %1011 = vperm.xlu0 %1484, %v1516_v35   ;;  %v1518_v21 = vpop.eup %1517 }
 0x375   : > { %v976_v37 = vpop.permute.xlu0 %975  ;;  %v1093_v22 = vmul.f32 128.0, %v1518_v21  ;;  %vm1097_vm5 = vweird.f32 %v1518_v21 }
 0x376   : > { %v981_v38 = vmul.f32 %v976_v37, %v957_v36 }
 0x377   : > { %v1094_v23 = vsub.f32 1.0, %v1093_v22 }
 0x378   : > { %v985_v40 = vadd.f32 %v981_v38, %v951_v39 }
 0x379   : > { %v1095_v24 = vmul.f32 %v1518_v21, %v1094_v23 }
 0x37a   : > { %989 = vst.msk [vmem:[#allocation5 + $0x18] sm:$0xff] %vm550_vm0, %v985_v40  ;;  %v1491_v40 = vld [vmem:[#allocation18 + $0x4] ss:$0 sm:$0xff] }
 0x37b   : > { %v1096_v25 = vadd.f32 %v1518_v21, %v1095_v24 }
 0x37d   : > { %v1098_v26 = vsel %vm1097_vm5, %v1518_v21, %v1096_v25 }
 0x381   : > { %v1000_v41 = vld [vmem:[#allocation5 + $0x18] sm:$0xff] }
 0x3c4   : > { %v1027_v42 = vpop.permute.xlu2 %1026 }
 0x3c5   : > { %v1032_v43 = vmul.f32 %v1027_v42, %v1000_v41 }
 0x3c7   : > { %1042 = vrot.lane.b32.xlu0 %v1032_v43, %s1870_s16  ;;  %v1492_v43 = vld [vmem:[#allocation18 + $0x5] ss:$0 sm:$0xff] }
 0x3cb   : > { %v1022_v44 = vpop.permute.xlu0 %1021 }
 0x3cc   : > { %v1031_v46 = vmul.f32 %v1022_v44, %v999_v45 }
 0x3ce   : > { %1038 = vrot.lane.b32.xlu1 %v1031_v46, %s1868_s11 }
 0x3de   : > { %v1017_v54 = vpop.permute.xlu1 %1016 }
 0x3df   : > { %v1030_v56 = vmul.f32 %v1017_v54, %v998_v55 }
 0x3e1   : > { %1034 = vrot.lane.b32.xlu2 %v1030_v56, %s1869_s17 }
 0x3e6   : > { %v961_v62 = vpop.permute.xlu1 %960  ;;  %v1012_v7 = vpop.permute.xlu0 %1011 }
 0x3e7   : > { %v978_v63 = vmul.f32 %v961_v62, %v954_v60 }
 0x3e9   : > { %v982_v1 = vadd.f32 %v978_v63, %v882_v0 }
 0x3eb   : > { %986 = vst.msk [vmem:[#allocation5] sm:$0xff] %vm550_vm0, %v982_v1 }
 0x3f2   : > { %v997_v8 = vld [vmem:[#allocation5] sm:$0xff] }
 0x3f3   : > { %v1029_v10 = vmul.f32 %v1012_v7, %v997_v8 }
 0x439   : > { %v1043_v13 = vpop.permute.xlu0 %1042 }
 0x43b   : > { %v1035_v9 = vpop.permute.xlu2 %1034 }
 0x43c   : > { %v1045_v11 = vsel %vm550_vm0, %v1029_v10, %v1035_v9 }
 0x440   : > { %v1039_v12 = vpop.permute.xlu1 %1038 }
 0x441   : > { %v1047_v14 = vsel %vm1046_vm3, %v1045_v11, %v1039_v12 }
 0x442   : > { %v1049_v15 = vsel %vm1048_vm4, %v1047_v14, %v1043_v13 }
 0x443   : > { %1084 = vmatmul.f32.vlgmr.msra.gmra.mxu3 %v1049_v15 }
 0x4c6   : > { %v1085_v17 = vpop.f32.mrf.mxu3 }
 0x4c7   : > { %v1086_v18 = vadd.f32 %v1490_v16, %v1085_v17 }
 0x4c9   : > { %v1089_v19 = vadd.f32 %v1086_v18, %v2118_v32 }
 0x4cb   : > { %1090 = vadd.xlane.f32.xlu2 %v1089_v19 }
 0x53e   : > { %v1091_v27 = vpop.xlane.xlu2 %1090 }
 0x53f   : > { %v1099_v28 = vmul.f32 %v1098_v26, %v1091_v27 }
 0x541   : > { %v1100_v29 = vsub.f32 %v1089_v19, %v1099_v28 }
 0x543   : > { %v1101_v30 = vmul.f32 %v1100_v29, %v1100_v29 }
 0x545   : > { %1102 = vadd.xlane.f32.xlu1 %v1101_v30 }
 0x5b8   : > { %v1103_v31 = vpop.xlane.xlu1 %1102 }
 0x5b9   : > { %v1104_v33 = vmul.f32 %v1103_v31, %v1098_v26 }
 0x5bb   : > { %v1105_v34 = vadd.f32 1e-05, %v1104_v33 }
 0x5bd   : > { %1519 = vrsqrt.f32 %v1105_v34  ;;  %vm1112_vm7 = vweird.f32 %v1105_v34 }
 0x5c3   : > { %v1520_v32 = vpop.eup %1519 }
 0x5c4   : > { %v1107_v35 = vmul.f32 %v1520_v32, %v1105_v34  ;;  %vm1113_vm6 = vweird.f32 %v1520_v32 }
 0x5c5   : > { %vm1114_vm8 = vmor %vm1112_vm7, %vm1113_vm6 }
 0x5c6   : > { %v1108_v36 = vmul.f32 %v1520_v32, %v1107_v35 }
 0x5c8   : > { %v1109_v37 = vmul.f32 0.5, %v1108_v36 }
 0x5ca   : > { %v1110_v38 = vsub.f32 1.5, %v1109_v37 }
 0x5cc   : > { %v1111_v39 = vmul.f32 %v1520_v32, %v1110_v38 }
 0x5ce   : > { %v1115_v41 = vsel %vm1114_vm8, %v1520_v32, %v1111_v39 }
 0x5cf   : > { %v1116_v42 = vmul.f32 %v1115_v41, %v1100_v29 }
 0x5d1   : > { %v1119_v44 = vmul.f32 %v1491_v40, %v1116_v42 }
 0x5d3   : > { %v1122_v45 = vadd.f32 %v1492_v43, %v1119_v44 }
 0x5d5   : > { %1123 = vst [vmem:[%s496_s26] sm:$0xff] %v1122_v45 }
 0x5d6   : > { %1788 = shalt.err (!%p1785_p13)
}
 0x5d7   : > { %1378 = dma.vmem_to_hbm [thread:$0]  (%p2008_p2), %s1138_s12, 128, %s1140_s3, %s1125_s30  }
 0x5d8 PF: > { %s2302_s10 = sld [smem:[#allocation28_spill]]  ;;  %s1151_s15 = sand.u32 1, %s1839_s27  }
 0x5d9   : > { %p1407_p0 = pnand %p1319_p6, %p2015_p7  ;;  %s1152_s22 = scalar_lea.sflag [#allocation8], %s1151_s15 }
 0x5db   : > { %p1408_p4 = pneg %p1407_p0 }
 0x5dd   : > { %1834 = dma.done.wait (%p1408_p4), %s1152_s22, 128  }
 0x5de   : > { %1836 = vsyncadd (%p1408_p4), %s1152_s22, 4294967168  ;;  %s30_s10 = sadd.s32 1, %s2302_s10   ;;  %s2303_s21 = sld [smem:[#allocation30_spill]] }
 0x5df   : > { %p27_p9 = scmp.ge.s32.totalorder %s30_s10, 4   ;;  %s2304_s30 = sld [smem:[#allocation27_spill]] }
 0x5e0   : > { %s2305_s9 = sld [smem:[#allocation29_spill]]  ;;  %s2306_s27 = smov %s1843_s28 }
 0x5e1   : > { %s2307_s28 = smov %s1847_s29  ;;  %29 = sbr.rel (!%p27_p9) target bundleno = 18 (0x12), region = 149 }
 0x5e4   : > { %s2308_s29 = smov %s2303_s21 }
 0x5e6   :  { %1158 = vsyncpa [#allocation7], 1 }
 0x5e7   :  { %1160 = vsyncpa [#allocation7 + $0x1], 1 }
 0x5e8   :  { %1161 = vsyncpa [#allocation10], 1 }
 0x5e9   :  { %1163 = vsyncpa [#allocation10 + $0x1], 1 }
 0x5ea   :  { %1164 = vsyncpa [#allocation13], 1 }
 0x5eb   :  { %1165 = vsyncpa [#allocation16], 1 }
 0x5ec   :  { %1166 = vsyncpa [#allocation19], 1 }
 0x5ed   :  { %1167 = vsyncpa [#allocation8], 1 }
 0x5ee   :  { %1169 = vsyncpa [#allocation8 + $0x1], 1 }

</bundles_post_ra>
